<compile_context>
chip_gen: v7x
topology: tpu7x:2x2x1
jax: 0.10.0
libtpu: 0.0.40
codegen_flags: <defaults>
</compile_context>

<pallas_src>
import jax
import jax.numpy as jnp
from jax.experimental import pallas as pl
from jax.experimental.pallas import tpu as pltpu

LANE = 128  # TPU lane width; hidden/output feature dims are padded to this.


def _round_up(n, m):
    return ((n + m - 1) // m) * m


def _pad_to(a, shape):
    return jnp.pad(a, [(0, s - d) for d, s in zip(a.shape, shape)])


def _mlp_kernel(x_ref, w1_ref, b1_ref, w2_ref, b2_ref, w3_ref, b3_ref, o_ref):
    """Fused 3-layer MLP on one (TB, in_size) batch tile.

    x is f32 (cast to bf16 here, hidden under the input DMA); weights bf16;
    biases f32; accumulation and all elementwise work in f32.
    """
    x = x_ref[...].astype(jnp.bfloat16)
    # Layer 1: Linear + ReLU
    h1 = jnp.dot(x, w1_ref[...], preferred_element_type=jnp.float32)
    h1 = jnp.maximum(h1 + b1_ref[...], 0.0)
    # Layer 2: Linear + ReLU
    h2 = jnp.dot(h1.astype(jnp.bfloat16), w2_ref[...],
                 preferred_element_type=jnp.float32)
    h2 = jnp.maximum(h2 + b2_ref[...], 0.0)
    # Layer 3: Linear (logits)
    out = jnp.dot(h2.astype(jnp.bfloat16), w3_ref[...],
                  preferred_element_type=jnp.float32) + b3_ref[...]
    o_ref[...] = out.astype(o_ref.dtype)  # lane-dense (128-wide) unmasked store


def init_params(key, input_size, hidden_size, output_size):
    """Deterministic init mirroring nn.Linear (weights stored transposed: (in, out))."""
    ks = jax.random.split(key, 6)
    dims = [(input_size, hidden_size[0]),
            (hidden_size[0], hidden_size[1]),
            (hidden_size[1], output_size)]
    params = {}
    for i, (fan_in, fan_out) in enumerate(dims, start=1):
        bound = 1.0 / (fan_in ** 0.5)  # same bound nn.Linear uses
        params[f"w{i}"] = jax.random.uniform(
            ks[2 * (i - 1)], (fan_in, fan_out), jnp.float32, -bound, bound)
        params[f"b{i}"] = jax.random.uniform(
            ks[2 * (i - 1) + 1], (1, fan_out), jnp.float32, -bound, bound)
    return params


def prepare_params(params):
    """Pad feature dims to 128 lanes (zero padding is inert) and cast weights to bf16.

    The w1 *input* dim is NOT padded: it matches x's true feature count, so x needs
    no wrapper-side padding and the resident w1 tile carries no dead rows (32 rows
    is already a multiple of the bf16 sublane pack of 16).
    """
    w1, b1 = params["w1"], params["b1"]
    w2, b2 = params["w2"], params["b2"]
    w3, b3 = params["w3"], params["b3"]
    h0_p = _round_up(w1.shape[1], LANE)
    h1_p = _round_up(w2.shape[1], LANE)
    out_p = _round_up(w3.shape[1], LANE)
    return {
        "w1": _pad_to(w1, (w1.shape[0], h0_p)).astype(jnp.bfloat16),
        "b1": _pad_to(b1, (1, h0_p)).astype(jnp.float32),
        "w2": _pad_to(w2, (h0_p, h1_p)).astype(jnp.bfloat16),
        "b2": _pad_to(b2, (1, h1_p)).astype(jnp.float32),
        "w3": _pad_to(w3, (h1_p, out_p)).astype(jnp.bfloat16),
        "b3": _pad_to(b3, (1, out_p)).astype(jnp.float32),
    }


def chatbot_forward_padded(x, prepped, *, max_tb=512):
    """Hot-path forward.

    x: (B, input_size) f32, unpadded.  Returns the raw (b_pad, 128) f32 slab:
    rows >= B and lanes >= output_size are padding and must be ignored (padded
    output lanes are exactly zero; padded batch rows are not meaningful).
    """
    w1, b1 = prepped["w1"], prepped["b1"]
    w2, b2 = prepped["w2"], prepped["b2"]
    w3, b3 = prepped["w3"], prepped["b3"]

    B, in_size = x.shape
    assert w1.shape[0] == in_size, "prepared w1 must match x's feature count"
    out_pad = w3.shape[1]

    # Overhead-bound kernel -> as few grid steps as possible.  tb is a sublane
    # multiple (8) and capped at max_tb (=512: a 512x128 f32 tile is ~256 KiB,
    # comfortably inside even v7x's 32 MiB default scoped VMEM with headroom).
    tb = min(_round_up(B, 8), max_tb)
    b_pad = _round_up(B, tb)
    n_tiles = b_pad // tb

    # Only pad the batch if B is not already a tile multiple (B=256 -> no pad,
    # no wrapper-side copy of x at all).  Features are never padded here.
    if b_pad != B:
        x = jnp.pad(x, ((0, b_pad - B), (0, 0)))

    resident = lambda a: pl.BlockSpec(a.shape, lambda i: (0,) * a.ndim)

    return pl.pallas_call(
        _mlp_kernel,
        out_shape=jax.ShapeDtypeStruct((b_pad, out_pad), jnp.float32),
        grid=(n_tiles,),
        in_specs=[
            # x tiled over batch; last dim == full array dim (32) so the block is legal.
            pl.BlockSpec((tb, in_size), lambda i: (i, 0)),
            resident(w1), resident(b1),   # tiny weights/biases stay VMEM-resident
            resident(w2), resident(b2),
            resident(w3), resident(b3),
        ],
        out_specs=pl.BlockSpec((tb, out_pad), lambda i: (i, 0)),
        compiler_params=pltpu.CompilerParams(
            # Only ask for the v7x 2-TC split once there is real per-core work;
            # a 1-tile grid (this test) is a single serial step everywhere.
            dimension_semantics=("parallel",) if n_tiles >= 8 else ("arbitrary",),
        ),
    )(x, w1, b1, w2, b2, w3, b3)


def chatbot_forward(x, prepped, output_size, *, max_tb=512):
    """nn.Module-shaped API: returns (B, output_size) f32 (slices the padded slab)."""
    out_p = chatbot_forward_padded(x, prepped, max_tb=max_tb)
    return out_p[: x.shape[0], :output_size]


def reference_forward_bf16(x, params):
    """bf16-matmul / f32-accumulate reference matching the kernel's numerics."""
    bf = jnp.bfloat16
    h1 = jnp.maximum(
        jnp.dot(x.astype(bf), params["w1"].astype(bf),
                preferred_element_type=jnp.float32) + params["b1"], 0.0)
    h2 = jnp.maximum(
        jnp.dot(h1.astype(bf), params["w2"].astype(bf),
                preferred_element_type=jnp.float32) + params["b2"], 0.0)
    return jnp.dot(h2.astype(bf), params["w3"].astype(bf),
                   preferred_element_type=jnp.float32) + params["b3"]


def reference_forward_f32(x, params):
    h1 = jnp.maximum(x @ params["w1"] + params["b1"], 0.0)
    h2 = jnp.maximum(h1 @ params["w2"] + params["b2"], 0.0)
    return h2 @ params["w3"] + params["b3"]


if __name__ == "__main__":
    key = jax.random.PRNGKey(0)
    k_x, k_p = jax.random.split(key)

    # Chatbot (BoW classifier) shapes; batch 256 fills one tile (single grid step).
    batch = 256
    input_size = 32        # vocabulary size (BoW vector length)
    hidden_size = [64, 48]
    output_size = 16       # number of intent classes

    x = jax.random.uniform(k_x, (batch, input_size), jnp.float32)
    params = init_params(k_p, input_size, hidden_size, output_size)
    prepped = prepare_params(params)

    fwd = jax.jit(chatbot_forward_padded)     # single dispatch; no pad/slice on hot path
    out_padded = jax.block_until_ready(fwd(x, prepped))

    assert out_padded.shape == (batch, 128)   # B already a tile multiple -> no row padding
    out = out_padded[:batch, :output_size]    # un-pad only here, in the consumer/test

    # Tight check against a bf16-consistent reference, loose check against pure f32.
    ref_bf16 = reference_forward_bf16(x, params)
    ref_f32 = reference_forward_f32(x, params)
    assert out.shape == (batch, output_size)
    assert jnp.allclose(out, ref_bf16, atol=1e-2, rtol=1e-2)
    assert jnp.allclose(out, ref_f32, atol=5e-2, rtol=5e-2)
    # Padded output lanes are exactly zero (zero weight columns + zero bias).
    assert jnp.all(out_padded[:, output_size:] == 0.0)

    print("KERNEL_OK")
</pallas_src>

<mosaic_0001>
module attributes {stable_mosaic.version = 11 : i64} {
  func.func @_mlp_kernel(%arg0: i32, %arg1: memref<256x32xf32, #tpu.memory_space<vmem>>, %arg2: memref<32x128xbf16, #tpu.memory_space<vmem>>, %arg3: memref<1x128xf32, #tpu.memory_space<vmem>>, %arg4: memref<128x128xbf16, #tpu.memory_space<vmem>>, %arg5: memref<1x128xf32, #tpu.memory_space<vmem>>, %arg6: memref<128x128xbf16, #tpu.memory_space<vmem>>, %arg7: memref<1x128xf32, #tpu.memory_space<vmem>>, %arg8: memref<256x128xf32, #tpu.memory_space<vmem>>) attributes {dimension_semantics = [#tpu.dimension_semantics<arbitrary>], iteration_bounds = array<i64: 1>, scalar_prefetch = 0 : i64, scratch_operands = 0 : i64, tpu.core_type = #tpu.core_type<tc>, window_params = [{transform_indices = @transform_0, window_bounds = array<i64: 256, 32>}, {pipeline_mode = #tpu.pipeline_mode<synchronous>, transform_indices = @transform_1, window_bounds = array<i64: 32, 128>}, {pipeline_mode = #tpu.pipeline_mode<synchronous>, transform_indices = @transform_2, window_bounds = array<i64: 1, 128>}, {pipeline_mode = #tpu.pipeline_mode<synchronous>, transform_indices = @transform_3, window_bounds = array<i64: 128, 128>}, {pipeline_mode = #tpu.pipeline_mode<synchronous>, transform_indices = @transform_4, window_bounds = array<i64: 1, 128>}, {pipeline_mode = #tpu.pipeline_mode<synchronous>, transform_indices = @transform_5, window_bounds = array<i64: 128, 128>}, {pipeline_mode = #tpu.pipeline_mode<synchronous>, transform_indices = @transform_6, window_bounds = array<i64: 1, 128>}, {transform_indices = @transform_7, window_bounds = array<i64: 256, 128>}]} {
    %c0 = arith.constant 0 : index
    %c0_0 = arith.constant 0 : index
    %0 = vector.load %arg1[%c0, %c0_0] : memref<256x32xf32, #tpu.memory_space<vmem>>, vector<256x32xf32>
    %1 = arith.truncf %0 : vector<256x32xf32> to vector<256x32xbf16>
    %c0_1 = arith.constant 0 : index
    %c0_2 = arith.constant 0 : index
    %2 = vector.load %arg2[%c0_1, %c0_2] : memref<32x128xbf16, #tpu.memory_space<vmem>>, vector<32x128xbf16>
    %cst = arith.constant dense<0.000000e+00> : vector<256x128xf32>
    %3 = tpu.matmul %1, %2, %cst {dimension_numbers = #tpu.dot_dimension_numbers<[1], [0], [0], [1], [0, 0, 1, 1], [], []>} : vector<256x32xbf16>, vector<32x128xbf16>, vector<256x128xf32> -> vector<256x128xf32>
    %c0_3 = arith.constant 0 : index
    %c0_4 = arith.constant 0 : index
    %4 = vector.load %arg3[%c0_3, %c0_4] : memref<1x128xf32, #tpu.memory_space<vmem>>, vector<1x128xf32>
    %5 = vector.broadcast %4 : vector<1x128xf32> to vector<256x128xf32>
    %6 = arith.addf %3, %5 : vector<256x128xf32>
    %cst_5 = arith.constant 0.000000e+00 : f32
    %7 = vector.broadcast %cst_5 : f32 to vector<256x128xf32>
    %8 = arith.maximumf %6, %7 : vector<256x128xf32>
    %9 = arith.truncf %8 : vector<256x128xf32> to vector<256x128xbf16>
    %c0_6 = arith.constant 0 : index
    %c0_7 = arith.constant 0 : index
    %10 = vector.load %arg4[%c0_6, %c0_7] : memref<128x128xbf16, #tpu.memory_space<vmem>>, vector<128x128xbf16>
    %cst_8 = arith.constant dense<0.000000e+00> : vector<256x128xf32>
    %11 = tpu.matmul %9, %10, %cst_8 {dimension_numbers = #tpu.dot_dimension_numbers<[1], [0], [0], [1], [0, 0, 1, 1], [], []>} : vector<256x128xbf16>, vector<128x128xbf16>, vector<256x128xf32> -> vector<256x128xf32>
    %c0_9 = arith.constant 0 : index
    %c0_10 = arith.constant 0 : index
    %12 = vector.load %arg5[%c0_9, %c0_10] : memref<1x128xf32, #tpu.memory_space<vmem>>, vector<1x128xf32>
    %13 = vector.broadcast %12 : vector<1x128xf32> to vector<256x128xf32>
    %14 = arith.addf %11, %13 : vector<256x128xf32>
    %cst_11 = arith.constant 0.000000e+00 : f32
    %15 = vector.broadcast %cst_11 : f32 to vector<256x128xf32>
    %16 = arith.maximumf %14, %15 : vector<256x128xf32>
    %17 = arith.truncf %16 : vector<256x128xf32> to vector<256x128xbf16>
    %c0_12 = arith.constant 0 : index
    %c0_13 = arith.constant 0 : index
    %18 = vector.load %arg6[%c0_12, %c0_13] : memref<128x128xbf16, #tpu.memory_space<vmem>>, vector<128x128xbf16>
    %cst_14 = arith.constant dense<0.000000e+00> : vector<256x128xf32>
    %19 = tpu.matmul %17, %18, %cst_14 {dimension_numbers = #tpu.dot_dimension_numbers<[1], [0], [0], [1], [0, 0, 1, 1], [], []>} : vector<256x128xbf16>, vector<128x128xbf16>, vector<256x128xf32> -> vector<256x128xf32>
    %c0_15 = arith.constant 0 : index
    %c0_16 = arith.constant 0 : index
    %20 = vector.load %arg7[%c0_15, %c0_16] : memref<1x128xf32, #tpu.memory_space<vmem>>, vector<1x128xf32>
    %21 = vector.broadcast %20 : vector<1x128xf32> to vector<256x128xf32>
    %22 = arith.addf %19, %21 : vector<256x128xf32>
    %c0_17 = arith.constant 0 : index
    %c0_18 = arith.constant 0 : index
    %23 = vector.load %arg8[%c0_17, %c0_18] : memref<256x128xf32, #tpu.memory_space<vmem>>, vector<256x128xf32>
    tpu.vector_store %arg8[%c0_17, %c0_18], %22 {strides = array<i32>} : memref<256x128xf32, #tpu.memory_space<vmem>>, vector<256x128xf32>,
    return
  }
  func.func @transform_0(%arg0: i32) -> (i32, i32) {
    %c0_i32 = arith.constant 0 : i32
    %c0_i32_0 = arith.constant 0 : i32
    return %arg0, %c0_i32 : i32, i32
  }
  func.func @transform_1(%arg0: i32) -> (i32, i32) {
    %c0_i32 = arith.constant 0 : i32
    %c0_i32_0 = arith.constant 0 : i32
    %c0_i32_1 = arith.constant 0 : i32
    return %c0_i32, %c0_i32_0 : i32, i32
  }
  func.func @transform_2(%arg0: i32) -> (i32, i32) {
    %c0_i32 = arith.constant 0 : i32
    %c0_i32_0 = arith.constant 0 : i32
    %c0_i32_1 = arith.constant 0 : i32
    return %c0_i32, %c0_i32_0 : i32, i32
  }
  func.func @transform_3(%arg0: i32) -> (i32, i32) {
    %c0_i32 = arith.constant 0 : i32
    %c0_i32_0 = arith.constant 0 : i32
    %c0_i32_1 = arith.constant 0 : i32
    return %c0_i32, %c0_i32_0 : i32, i32
  }
  func.func @transform_4(%arg0: i32) -> (i32, i32) {
    %c0_i32 = arith.constant 0 : i32
    %c0_i32_0 = arith.constant 0 : i32
    %c0_i32_1 = arith.constant 0 : i32
    return %c0_i32, %c0_i32_0 : i32, i32
  }
  func.func @transform_5(%arg0: i32) -> (i32, i32) {
    %c0_i32 = arith.constant 0 : i32
    %c0_i32_0 = arith.constant 0 : i32
    %c0_i32_1 = arith.constant 0 : i32
    return %c0_i32, %c0_i32_0 : i32, i32
  }
  func.func @transform_6(%arg0: i32) -> (i32, i32) {
    %c0_i32 = arith.constant 0 : i32
    %c0_i32_0 = arith.constant 0 : i32
    %c0_i32_1 = arith.constant 0 : i32
    return %c0_i32, %c0_i32_0 : i32, i32
  }
  func.func @transform_7(%arg0: i32) -> (i32, i32) {
    %c0_i32 = arith.constant 0 : i32
    %c0_i32_0 = arith.constant 0 : i32
    return %arg0, %c0_i32 : i32, i32
  }
}

</mosaic_0001>

<bundles_post_ra>
// kernel: chatbot_forward_padded.1
= control target key start
LH: loop header
LB: loop body
LE: loop exit
PB: predicated region body
PF: predicated region fallthrough
CT: control target
= control target key end

     0   :  { %vm99_vm0 = vcmask 261120   ;;  %s1542_s0 = inlined_call_operand.vmem [shape: f32[256,32], index: 0, kind: input, shape index: {}]   ;;  %s1543_s1 = inlined_call_operand.vmem [shape: bf16[32,128], index: 1, kind: input, shape index: {}]   ;;  %s1544_s2 = inlined_call_operand.vmem [shape: f32[1,128], index: 2, kind: input, shape index: {}]   ;;  %s1545_s3 = inlined_call_operand.vmem [shape: bf16[128,128], index: 3, kind: input, shape index: {}]   ;;  %s1546_s4 = inlined_call_operand.vmem [shape: f32[1,128], index: 4, kind: input, shape index: {}]   ;;  %s1547_s5 = inlined_call_operand.vmem [shape: bf16[128,128], index: 5, kind: input, shape index: {}]   ;;  %s1548_s6 = inlined_call_operand.vmem [shape: f32[1,128], index: 6, kind: input, shape index: {}]   ;;  %s1549_s7 = inlined_call_operand.hbm [shape: f32[256,128], index: 7, kind: output, shape index: {}]  }
   0x1   :  { %v1159_v0 = vld [vmem:[%s1543_s1] sm:$0xff]   ;;  %v1160_v1 = vld [vmem:[%s1543_s1 + $0x8] sm:$0xff]   ;;  %v30_v5 = vld [vmem:[%s1542_s0 + $0x10] sm:$0xff] }
   0x2   :  { %1020 = vmatprep.subr.bf16.mxu0 %v1159_v0  ;;  %v28_v2 = vld [vmem:[%s1542_s0] sm:$0xff]  ;;  %v29_v3 = vld [vmem:[%s1542_s0 + $0x8] sm:$0xff]  ;;  %1152 = vmatprep.subr.bf16.mxu1 %v1159_v0  ;;  %v31_v6 = vld [vmem:[%s1542_s0 + $0x18] sm:$0xff] }
   0x3   :  { %1021 = vmatpush3.bf16.msra.mxu0 %v1159_v0  ;;  %v60_v4 = vpack.c.bf16 %v29_v3, %v28_v2  ;;  %1154 = vmatpush3.bf16.msra.mxu1 %v1159_v0  ;;  %v32_v7 = vld [vmem:[%s1542_s0 + $0x20] sm:$0xff]  ;;  %v33_v8 = vld [vmem:[%s1542_s0 + $0x28] sm:$0xff]  ;;  %v61_v9 = vpack.c.bf16 %v31_v6, %v30_v5  ;;  %v46_v14 = vld [vmem:[%s1542_s0 + $0x90] sm:$0xff] }
   0x4   :  { %1022 = vmatprep.subr.bf16.mxu0 %v1160_v1  ;;  %1153 = vmatprep.subr.bf16.mxu1 %v1160_v1  ;;  %v62_v10 = vpack.c.bf16 %v33_v8, %v32_v7  ;;  %v44_v11 = vld [vmem:[%s1542_s0 + $0x80] sm:$0xff]  ;;  %v45_v12 = vld [vmem:[%s1542_s0 + $0x88] sm:$0xff]  ;;  %v47_v15 = vld [vmem:[%s1542_s0 + $0x98] sm:$0xff] }
   0x5   :  { %1024 = vmatprep.mubr.msk.bf16.mxu0 %vm99_vm0, %v60_v4  ;;  %v68_v13 = vpack.c.bf16 %v45_v12, %v44_v11  ;;  %v48_v16 = vld [vmem:[%s1542_s0 + $0xa0] sm:$0xff]  ;;  %v69_v17 = vpack.c.bf16 %v47_v15, %v46_v14  ;;  %v49_v18 = vld [vmem:[%s1542_s0 + $0xa8] sm:$0xff]  ;;  %v34_v19 = vld [vmem:[%s1542_s0 + $0x30] sm:$0xff] }
   0x6   :  { %v35_v20 = vld [vmem:[%s1542_s0 + $0x38] sm:$0xff]  ;;  %v36_v21 = vld [vmem:[%s1542_s0 + $0x40] sm:$0xff]  ;;  %v70_v22 = vpack.c.bf16 %v49_v18, %v48_v16  ;;  %v37_v23 = vld [vmem:[%s1542_s0 + $0x48] sm:$0xff] }
   0x7   :  { %1023 = vmatpush3.bf16.msra.mxu0 %v1160_v1  ;;  %1155 = vmatpush3.bf16.msra.mxu1 %v1160_v1  ;;  %v50_v24 = vld [vmem:[%s1542_s0 + $0xb0] sm:$0xff]  ;;  %v51_v25 = vld [vmem:[%s1542_s0 + $0xb8] sm:$0xff]  ;;  %v52_v26 = vld [vmem:[%s1542_s0 + $0xc0] sm:$0xff]  ;;  %v63_v29 = vpack.c.bf16 %v35_v20, %v34_v19  ;;  %v64_v31 = vpack.c.bf16 %v37_v23, %v36_v21 }
   0x8   :  { %1040 = vmatprep.mubr.msk.bf16.mxu1 %vm99_vm0, %v68_v13  ;;  %v53_v27 = vld [vmem:[%s1542_s0 + $0xc8] sm:$0xff]  ;;  %v1161_v28 = vld [vmem:[%s1545_s3] sm:$0xff]   ;;  %v71_v32 = vpack.c.bf16 %v51_v25, %v50_v24  ;;  %v38_v34 = vld [vmem:[%s1542_s0 + $0x50] sm:$0xff] }
   0x9   :  { %v1162_v30 = vld [vmem:[%s1545_s3 + $0x8] sm:$0xff]   ;;  %1056 = vmatprep.subr.bf16.mxu1 %v1161_v28  ;;  %v72_v33 = vpack.c.bf16 %v53_v27, %v52_v26  ;;  %v39_v35 = vld [vmem:[%s1542_s0 + $0x58] sm:$0xff]  ;;  %v1163_v36 = vld [vmem:[%s1545_s3 + $0x10] sm:$0xff]  }
   0xa   :  { %1025 = vmatmul.mubr.msk.bf16.vlgmr.msra.gmra.mrb[0].mxu0 %vm99_vm0, %v61_v9  ;;  %1041 = vmatmul.mubr.msk.bf16.vlgmr.msra.gmra.mrb[0].mxu1 %vm99_vm0, %v69_v17  ;;  %v40_v37 = vld [vmem:[%s1542_s0 + $0x60] sm:$0xff]  ;;  %v41_v38 = vld [vmem:[%s1542_s0 + $0x68] sm:$0xff]  ;;  %v54_v39 = vld [vmem:[%s1542_s0 + $0xd0] sm:$0xff]  ;;  %v65_v44 = vpack.c.bf16 %v39_v35, %v38_v34 }
   0xb   :  { %1028 = vmatprep.mubr.msk.bf16.mxu0 %vm99_vm0, %v62_v10  ;;  %1044 = vmatprep.mubr.msk.bf16.mxu1 %vm99_vm0, %v70_v22  ;;  %v55_v40 = vld [vmem:[%s1542_s0 + $0xd8] sm:$0xff]  ;;  %v56_v41 = vld [vmem:[%s1542_s0 + $0xe0] sm:$0xff]  ;;  %v57_v42 = vld [vmem:[%s1542_s0 + $0xe8] sm:$0xff]  ;;  %v66_v45 = vpack.c.bf16 %v41_v38, %v40_v37 }
   0xc   :  { %1057 = vmatpush3.bf16.msra.mxu1 %v1161_v28  ;;  %v1164_v43 = vld [vmem:[%s1545_s3 + $0x18] sm:$0xff]   ;;  %v73_v46 = vpack.c.bf16 %v55_v40, %v54_v39  ;;  %v74_v47 = vpack.c.bf16 %v57_v42, %v56_v41  ;;  %v1165_v48 = vld [vmem:[%s1545_s3 + $0x20] sm:$0xff]  }
   0xd   :  { %1058 = vmatprep.subr.bf16.mxu1 %v1162_v30 }
  0x10   :  { %1059 = vmatpush3.bf16.msra.mxu1 %v1162_v30 }
  0x11   :  { %1060 = vmatprep.subr.bf16.mxu1 %v1163_v36 }
  0x12   :  { %1029 = vmatmul.mubr.msk.bf16.gmra.mrb[4].mxu0 %vm99_vm0, %v63_v29  ;;  %1045 = vmatmul.mubr.msk.bf16.gmra.mrb[4].mxu1 %vm99_vm0, %v71_v32 }
  0x13   :  { %1032 = vmatprep.mubr.msk.bf16.mxu0 %vm99_vm0, %v64_v31  ;;  %1048 = vmatprep.mubr.msk.bf16.mxu1 %vm99_vm0, %v72_v33 }
  0x14   :  { %1061 = vmatpush3.bf16.msra.mxu1 %v1163_v36 }
  0x15   :  { %1062 = vmatprep.subr.bf16.mxu1 %v1164_v43 }
  0x16   :  { %12 = vsyncpa [#allocation3], 0  ;;  %v42_v49 = vld [vmem:[%s1542_s0 + $0x70] sm:$0xff]  ;;  %v43_v50 = vld [vmem:[%s1542_s0 + $0x78] sm:$0xff] }
  0x17   :  { %v58_v51 = vld [vmem:[%s1542_s0 + $0xf0] sm:$0xff]  ;;  %v59_v52 = vld [vmem:[%s1542_s0 + $0xf8] sm:$0xff]  ;;  %v1166_v53 = vld [vmem:[%s1545_s3 + $0x28] sm:$0xff]   ;;  %v67_v54 = vpack.c.bf16 %v43_v50, %v42_v49 }
  0x18   :  { %1063 = vmatpush3.bf16.msra.mxu1 %v1164_v43  ;;  %v75_v55 = vpack.c.bf16 %v59_v52, %v58_v51  ;;  %v1167_v56 = vld [vmem:[%s1545_s3 + $0x30] sm:$0xff]   ;;  %v1168_v57 = vld [vmem:[%s1545_s3 + $0x38] sm:$0xff]   ;;  %v1169_v58 = vld [vmem:[%s1547_s5] sm:$0xff]  }
  0x19   :  { %1064 = vmatprep.subr.bf16.mxu1 %v1165_v48  ;;  %v1170_v59 = vld [vmem:[%s1547_s5 + $0x8] sm:$0xff]   ;;  %1104 = vmatprep.subr.bf16.mxu0 %v1169_v58  ;;  %v1171_v60 = vld [vmem:[%s1547_s5 + $0x10] sm:$0xff]   ;;  %v1172_v61 = vld [vmem:[%s1547_s5 + $0x18] sm:$0xff]  }
  0x1a   :  { %1033 = vmatmul.mubr.msk.bf16.gmra.mrb[8].mxu0 %vm99_vm0, %v65_v44  ;;  %1049 = vmatmul.mubr.msk.bf16.gmra.mrb[8].mxu1 %vm99_vm0, %v73_v46  ;;  %v1173_v62 = vld [vmem:[%s1547_s5 + $0x20] sm:$0xff]   ;;  %v1174_v63 = vld [vmem:[%s1547_s5 + $0x28] sm:$0xff]  }
  0x1b   :  { %1036 = vmatprep.mubr.msk.bf16.mxu0 %vm99_vm0, %v66_v45  ;;  %1052 = vmatprep.mubr.msk.bf16.mxu1 %vm99_vm0, %v74_v47  ;;  %v1407_v0 = vld [vmem:[%s1544_s2] ss:$0 sm:$0xff] }
  0x1c   :  { %1065 = vmatpush3.bf16.msra.mxu1 %v1165_v48  ;;  %1105 = vmatpush3.bf16.msra.mxu0 %v1169_v58 }
  0x1d   :  { %1066 = vmatprep.subr.bf16.mxu1 %v1166_v53  ;;  %1106 = vmatprep.subr.bf16.mxu0 %v1170_v59 }
  0x20   :  { %1067 = vmatpush3.bf16.msra.mxu1 %v1166_v53  ;;  %1107 = vmatpush3.bf16.msra.mxu0 %v1170_v59 }
  0x21   :  { %1068 = vmatprep.subr.bf16.mxu1 %v1167_v56  ;;  %1108 = vmatprep.subr.bf16.mxu0 %v1171_v60 }
  0x22   :  { %1037 = vmatmul.mubr.msk.bf16.gmra.mrb[12].mxu0 %vm99_vm0, %v67_v54  ;;  %1053 = vmatmul.mubr.msk.bf16.gmra.mrb[12].mxu1 %vm99_vm0, %v75_v55 }
  0x24   :  { %1069 = vmatpush3.bf16.msra.mxu1 %v1167_v56  ;;  %1109 = vmatpush3.bf16.msra.mxu0 %v1171_v60 }
  0x25   :  { %1070 = vmatprep.subr.bf16.mxu1 %v1168_v57  ;;  %1110 = vmatprep.subr.bf16.mxu0 %v1172_v61 }
  0x28   :  { %1071 = vmatpush3.bf16.msra.mxu1 %v1168_v57  ;;  %1111 = vmatpush3.bf16.msra.mxu0 %v1172_v61 }
  0x29   :  { %1112 = vmatprep.subr.bf16.mxu0 %v1173_v62 }
  0x2c   :  { %1113 = vmatpush3.bf16.msra.mxu0 %v1173_v62 }
  0x2d   :  { %1114 = vmatprep.subr.bf16.mxu0 %v1174_v63 }
  0x30   :  { %1115 = vmatpush3.bf16.msra.mxu0 %v1174_v63 }
  0xdd   :  { %v1026_v1 = vpop.f32.mrb[0].mxu0  ;;  %v1042_v4 = vpop.f32.mrb[0].mxu1 }
  0xde   :  { %v191_v2 = vadd.f32 %v1026_v1, %v1407_v0  ;;  %v182_v3 = vpop.f32.mrb[1].mxu0  ;;  %v255_v7 = vadd.f32 %v1042_v4, %v1407_v0  ;;  %v246_v8 = vpop.f32.mrb[1].mxu1 }
  0xdf   :  { %v183_v5 = vadd.f32 %v1407_v0, %v182_v3  ;;  %v1027_v6 = vpop.f32.mrb[2].mxu0  ;;  %v247_v11 = vadd.f32 %v1407_v0, %v246_v8  ;;  %v1043_v12 = vpop.f32.mrb[2].mxu1 }
  0xe0   :  { %v194_v9 = vadd.f32 %v1027_v6, %v1407_v0  ;;  %v185_v10 = vpop.f32.mrb[3].mxu0  ;;  %v327_v14 = vmax.f32 %v255_v7, 0.0  ;;  %v258_v15 = vadd.f32 %v1043_v12, %v1407_v0  ;;  %v249_v16 = vpop.f32.mrb[3].mxu1  ;;  %v311_v17 = vmax.f32 %v191_v2, 0.0 }
  0xe1   :  { %v186_v13 = vadd.f32 %v1407_v0, %v185_v10  ;;  %v325_v19 = vmax.f32 %v247_v11, 0.0  ;;  %v250_v20 = vadd.f32 %v1407_v0, %v249_v16  ;;  %v309_v21 = vmax.f32 %v183_v5, 0.0 }
  0xe2   :  { %v312_v18 = vmax.f32 %v194_v9, 0.0  ;;  %v328_v23 = vmax.f32 %v258_v15, 0.0 }
  0xe3   :  { %v310_v22 = vmax.f32 %v186_v13, 0.0  ;;  %v326_v25 = vmax.f32 %v250_v20, 0.0 }
  0xe4   :  { %v342_v24 = vpack.c.bf16 %v312_v18, %v311_v17  ;;  %v1417_v28 = vpack.c.bf16 %v328_v23, %v327_v14 }
  0xe5   :  { %v341_v26 = vpack.c.bf16 %v310_v22, %v309_v21  ;;  %v1030_v27 = vpop.f32.mrb[4].mxu0  ;;  %v1420_v31 = vpack.c.bf16 %v326_v25, %v325_v19  ;;  %v1046_v32 = vpop.f32.mrb[4].mxu1 }
  0xe6   :  { %v207_v29 = vadd.f32 %v1030_v27, %v1407_v0  ;;  %v198_v30 = vpop.f32.mrb[5].mxu0  ;;  %v271_v35 = vadd.f32 %v1046_v32, %v1407_v0  ;;  %v262_v36 = vpop.f32.mrb[5].mxu1 }
  0xe7   :  { %v199_v33 = vadd.f32 %v1407_v0, %v198_v30  ;;  %v1031_v34 = vpop.f32.mrb[6].mxu0  ;;  %1072 = vmatprep.mubr.bf16.mxu1 %v341_v26  ;;  %v263_v39 = vadd.f32 %v1407_v0, %v262_v36  ;;  %v1047_v40 = vpop.f32.mrb[6].mxu1 }
  0xe8   :  { %v210_v37 = vadd.f32 %v1031_v34, %v1407_v0  ;;  %v201_v38 = vpop.f32.mrb[7].mxu0  ;;  %1073 = vmatmul.mubr.bf16.vlgmr.msra.gmra.mrb[16].mxu1 %v342_v24  ;;  %v331_v42 = vmax.f32 %v271_v35, 0.0  ;;  %v274_v43 = vadd.f32 %v1047_v40, %v1407_v0  ;;  %v265_v44 = vpop.f32.mrb[7].mxu1  ;;  %v315_v45 = vmax.f32 %v207_v29, 0.0 }
  0xe9   :  { %v202_v41 = vadd.f32 %v1407_v0, %v201_v38  ;;  %v329_v47 = vmax.f32 %v263_v39, 0.0  ;;  %v266_v48 = vadd.f32 %v1407_v0, %v265_v44  ;;  %v313_v49 = vmax.f32 %v199_v33, 0.0 }
  0xea   :  { %v316_v46 = vmax.f32 %v210_v37, 0.0  ;;  %v332_v51 = vmax.f32 %v274_v43, 0.0 }
  0xeb   :  { %v314_v50 = vmax.f32 %v202_v41, 0.0  ;;  %v330_v53 = vmax.f32 %v266_v48, 0.0 }
  0xec   :  { %v344_v52 = vpack.c.bf16 %v316_v46, %v315_v45  ;;  %v1429_v56 = vpack.c.bf16 %v332_v51, %v331_v42 }
  0xed   :  { %v343_v54 = vpack.c.bf16 %v314_v50, %v313_v49  ;;  %v1034_v55 = vpop.f32.mrb[8].mxu0  ;;  %v351_v59 = vpack.c.bf16 %v330_v53, %v329_v47  ;;  %v1050_v60 = vpop.f32.mrb[8].mxu1 }
  0xee   :  { %v223_v57 = vadd.f32 %v1034_v55, %v1407_v0  ;;  %v214_v58 = vpop.f32.mrb[9].mxu0  ;;  %v287_v63 = vadd.f32 %v1050_v60, %v1407_v0  ;;  %v278_v1 = vpop.f32.mrb[9].mxu1 }
  0xef   :  { %v215_v61 = vadd.f32 %v1407_v0, %v214_v58  ;;  %v1035_v62 = vpop.f32.mrb[10].mxu0  ;;  %1076 = vmatprep.mubr.bf16.mxu1 %v343_v54  ;;  %v279_v4 = vadd.f32 %v1407_v0, %v278_v1  ;;  %v1051_v5 = vpop.f32.mrb[10].mxu1 }
  0xf0   :  { %v226_v2 = vadd.f32 %v1035_v62, %v1407_v0  ;;  %v217_v3 = vpop.f32.mrb[11].mxu0  ;;  %1077 = vmatmul.mubr.bf16.gmra.mrb[20].mxu1 %v344_v52  ;;  %v335_v7 = vmax.f32 %v287_v63, 0.0  ;;  %v290_v8 = vadd.f32 %v1051_v5, %v1407_v0  ;;  %v281_v9 = vpop.f32.mrb[11].mxu1  ;;  %v319_v10 = vmax.f32 %v223_v57, 0.0  ;;  %v1176_v52 = vld [vmem:[%s1547_s5 + $0x38] sm:$0xff]  }
  0xf1   :  { %v218_v6 = vadd.f32 %v1407_v0, %v217_v3  ;;  %v333_v12 = vmax.f32 %v279_v4, 0.0  ;;  %v282_v13 = vadd.f32 %v1407_v0, %v281_v9  ;;  %v317_v14 = vmax.f32 %v215_v61, 0.0 }
  0xf2   :  { %v320_v11 = vmax.f32 %v226_v2, 0.0  ;;  %v336_v16 = vmax.f32 %v290_v8, 0.0 }
  0xf3   :  { %v318_v15 = vmax.f32 %v218_v6, 0.0  ;;  %v334_v18 = vmax.f32 %v282_v13, 0.0 }
  0xf4   :  { %v346_v17 = vpack.c.bf16 %v320_v11, %v319_v10  ;;  %v354_v21 = vpack.c.bf16 %v336_v16, %v335_v7 }
  0xf5   :  { %v345_v19 = vpack.c.bf16 %v318_v15, %v317_v14  ;;  %v1038_v20 = vpop.f32.mrb[12].mxu0  ;;  %v353_v24 = vpack.c.bf16 %v334_v18, %v333_v12  ;;  %v1054_v25 = vpop.f32.mrb[12].mxu1 }
  0xf6   :  { %v239_v22 = vadd.f32 %v1038_v20, %v1407_v0  ;;  %v230_v23 = vpop.f32.mrb[13].mxu0  ;;  %v303_v29 = vadd.f32 %v1054_v25, %v1407_v0  ;;  %v294_v30 = vpop.f32.mrb[13].mxu1 }
  0xf7   :  { %v231_v26 = vadd.f32 %v1407_v0, %v230_v23  ;;  %v1039_v27 = vpop.f32.mrb[14].mxu0  ;;  %1080 = vmatprep.mubr.bf16.mxu1 %v345_v19  ;;  %v295_v34 = vadd.f32 %v1407_v0, %v294_v30  ;;  %v1055_v35 = vpop.f32.mrb[14].mxu1 }
  0xf8   :  { %v242_v32 = vadd.f32 %v1039_v27, %v1407_v0  ;;  %v233_v33 = vpop.f32.mrb[15].mxu0  ;;  %1081 = vmatmul.mubr.bf16.gmra.mrb[24].mxu1 %v346_v17  ;;  %v339_v37 = vmax.f32 %v303_v29, 0.0  ;;  %v306_v38 = vadd.f32 %v1055_v35, %v1407_v0  ;;  %v297_v39 = vpop.f32.mrb[15].mxu1  ;;  %v323_v40 = vmax.f32 %v239_v22, 0.0 }
  0xf9   :  { %v234_v36 = vadd.f32 %v1407_v0, %v233_v33  ;;  %v337_v42 = vmax.f32 %v295_v34, 0.0  ;;  %v298_v43 = vadd.f32 %v1407_v0, %v297_v39  ;;  %v321_v44 = vmax.f32 %v231_v26, 0.0  ;;  %v1175_v0 = vld [vmem:[%s1547_s5 + $0x30] sm:$0xff]  }
  0xfa   :  { %v324_v41 = vmax.f32 %v242_v32, 0.0  ;;  %v340_v46 = vmax.f32 %v306_v38, 0.0  ;;  %1116 = vmatprep.subr.bf16.mxu0 %v1175_v0 }
  0xfb   :  { %v322_v45 = vmax.f32 %v234_v36, 0.0  ;;  %v338_v48 = vmax.f32 %v298_v43, 0.0  ;;  %1117 = vmatpush3.bf16.msra.mxu0 %v1175_v0 }
  0xfc   :  { %v348_v47 = vpack.c.bf16 %v324_v41, %v323_v40  ;;  %v356_v50 = vpack.c.bf16 %v340_v46, %v339_v37  ;;  %1118 = vmatprep.subr.bf16.mxu0 %v1176_v52 }
  0xfd   :  { %v347_v49 = vpack.c.bf16 %v322_v45, %v321_v44  ;;  %v355_v51 = vpack.c.bf16 %v338_v48, %v337_v42 }
  0xff   :  { %1084 = vmatprep.mubr.bf16.mxu1 %v347_v49  ;;  %1119 = vmatpush3.bf16.msra.mxu0 %v1176_v52 }
 0x100   :  { %1085 = vmatmul.mubr.bf16.gmra.mrb[28].mxu1 %v348_v47 }
 0x101   :  { %1088 = vmatprep.mubr.bf16.mxu1 %v1420_v31 }
 0x108   :  { %1089 = vmatmul.mubr.bf16.gmra.mrb[32].mxu1 %v1417_v28  ;;  %v1459_v28 = vld [vmem:[%s1546_s4] ss:$0 sm:$0xff] }
 0x109   :  { %1092 = vmatprep.mubr.bf16.mxu1 %v351_v59 }
 0x110   :  { %1093 = vmatmul.mubr.bf16.gmra.mrb[36].mxu1 %v1429_v56 }
 0x111   :  { %1096 = vmatprep.mubr.bf16.mxu1 %v353_v24 }
 0x118   :  { %1097 = vmatmul.mubr.bf16.gmra.mrb[40].mxu1 %v354_v21 }
 0x119   :  { %1100 = vmatprep.mubr.bf16.mxu1 %v355_v51 }
 0x120   :  { %1101 = vmatmul.mubr.bf16.gmra.mrb[44].mxu1 %v356_v50 }
 0x1bb   :  { %v1074_v31 = vpop.f32.mrb[16].mxu1 }
 0x1bc   :  { %v471_v53 = vadd.f32 %v1074_v31, %v1459_v28  ;;  %v462_v54 = vpop.f32.mrb[17].mxu1 }
 0x1bd   :  { %v463_v55 = vadd.f32 %v1459_v28, %v462_v54  ;;  %v1075_v56 = vpop.f32.mrb[18].mxu1 }
 0x1be   :  { %v474_v57 = vadd.f32 %v1075_v56, %v1459_v28  ;;  %v465_v58 = vpop.f32.mrb[19].mxu1  ;;  %v591_v60 = vmax.f32 %v471_v53, 0.0 }
 0x1bf   :  { %v466_v59 = vadd.f32 %v1459_v28, %v465_v58  ;;  %v589_v62 = vmax.f32 %v463_v55, 0.0 }
 0x1c0   :  { %v592_v61 = vmax.f32 %v474_v57, 0.0 }
 0x1c1   :  { %v590_v63 = vmax.f32 %v466_v59, 0.0 }
 0x1c2   :  { %v622_v1 = vpack.c.bf16 %v592_v61, %v591_v60 }
 0x1c3   :  { %v621_v2 = vpack.c.bf16 %v590_v63, %v589_v62  ;;  %v1078_v3 = vpop.f32.mrb[20].mxu1 }
 0x1c4   :  { %v487_v4 = vadd.f32 %v1078_v3, %v1459_v28  ;;  %v478_v5 = vpop.f32.mrb[21].mxu1 }
 0x1c5   :  { %v479_v6 = vadd.f32 %v1459_v28, %v478_v5  ;;  %v1079_v7 = vpop.f32.mrb[22].mxu1  ;;  %1120 = vmatprep.mubr.bf16.mxu0 %v621_v2 }
 0x1c6   :  { %v490_v8 = vadd.f32 %v1079_v7, %v1459_v28  ;;  %v481_v9 = vpop.f32.mrb[23].mxu1  ;;  %1121 = vmatmul.mubr.bf16.vlgmr.msra.gmra.mrb[16].mxu0 %v622_v1  ;;  %v595_v11 = vmax.f32 %v487_v4, 0.0 }
 0x1c7   :  { %v482_v10 = vadd.f32 %v1459_v28, %v481_v9  ;;  %v593_v13 = vmax.f32 %v479_v6, 0.0 }
 0x1c8   :  { %v596_v12 = vmax.f32 %v490_v8, 0.0 }
 0x1c9   :  { %v594_v14 = vmax.f32 %v482_v10, 0.0 }
 0x1ca   :  { %v624_v15 = vpack.c.bf16 %v596_v12, %v595_v11 }
 0x1cb   :  { %v623_v16 = vpack.c.bf16 %v594_v14, %v593_v13  ;;  %v1082_v17 = vpop.f32.mrb[24].mxu1 }
 0x1cc   :  { %v503_v18 = vadd.f32 %v1082_v17, %v1459_v28  ;;  %v494_v19 = vpop.f32.mrb[25].mxu1 }
 0x1cd   :  { %v495_v20 = vadd.f32 %v1459_v28, %v494_v19  ;;  %v1083_v21 = vpop.f32.mrb[26].mxu1  ;;  %1124 = vmatprep.mubr.bf16.mxu0 %v623_v16 }
 0x1ce   :  { %v506_v22 = vadd.f32 %v1083_v21, %v1459_v28  ;;  %v497_v23 = vpop.f32.mrb[27].mxu1  ;;  %1125 = vmatmul.mubr.bf16.gmra.mrb[20].mxu0 %v624_v15  ;;  %v599_v25 = vmax.f32 %v503_v18, 0.0 }
 0x1cf   :  { %v498_v24 = vadd.f32 %v1459_v28, %v497_v23  ;;  %v597_v27 = vmax.f32 %v495_v20, 0.0 }
 0x1d0   :  { %v600_v26 = vmax.f32 %v506_v22, 0.0 }
 0x1d1   :  { %v598_v29 = vmax.f32 %v498_v24, 0.0 }
 0x1d2   :  { %v626_v30 = vpack.c.bf16 %v600_v26, %v599_v25 }
 0x1d3   :  { %v625_v32 = vpack.c.bf16 %v598_v29, %v597_v27  ;;  %v1086_v33 = vpop.f32.mrb[28].mxu1 }
 0x1d4   :  { %v519_v34 = vadd.f32 %v1086_v33, %v1459_v28  ;;  %v510_v35 = vpop.f32.mrb[29].mxu1 }
 0x1d5   :  { %v511_v36 = vadd.f32 %v1459_v28, %v510_v35  ;;  %v1087_v37 = vpop.f32.mrb[30].mxu1  ;;  %1128 = vmatprep.mubr.bf16.mxu0 %v625_v32 }
 0x1d6   :  { %v522_v38 = vadd.f32 %v1087_v37, %v1459_v28  ;;  %v513_v39 = vpop.f32.mrb[31].mxu1  ;;  %1129 = vmatmul.mubr.bf16.gmra.mrb[24].mxu0 %v626_v30  ;;  %v603_v41 = vmax.f32 %v519_v34, 0.0 }
 0x1d7   :  { %v514_v40 = vadd.f32 %v1459_v28, %v513_v39  ;;  %v601_v43 = vmax.f32 %v511_v36, 0.0 }
 0x1d8   :  { %v604_v42 = vmax.f32 %v522_v38, 0.0 }
 0x1d9   :  { %v602_v44 = vmax.f32 %v514_v40, 0.0  ;;  %v1496_v40 = vld [vmem:[%s1548_s6] ss:$0 sm:$0xff]  ;;  %s1201_s6 = smov [#allocation2]  }
 0x1da   :  { %v628_v45 = vpack.c.bf16 %v604_v42, %v603_v41  ;;  %s906_s29 = sshll.u32 %s1201_s6, 4  ;;  %s907_s29 = int_to_ptr.vmem [resolvable:$true] %s906_s29 }
 0x1db   :  { %v627_v46 = vpack.c.bf16 %v602_v44, %v601_v43  ;;  %v1090_v47 = vpop.f32.mrb[32].mxu1  ;;  %s1177_s30 = scalar_lea.vmem %s907_s29, 4096  ;;  %p1182_p1 = scmp.lt.s32.totalorder %s907_s29, %s907_s29 }
 0x1dc   :  { %v535_v48 = vadd.f32 %v1090_v47, %v1459_v28  ;;  %v526_v49 = vpop.f32.mrb[33].mxu1  ;;  %p1178_p0 = scmp.ne.s32.totalorder %s907_s29, %s1177_s30  ;;  %p1183_p2 = scmp.lt.s32.totalorder %s1177_s30, %s1177_s30 }
 0x1dd   :  { %v527_v50 = vadd.f32 %v1459_v28, %v526_v49  ;;  %v1091_v51 = vpop.f32.mrb[34].mxu1  ;;  %1132 = vmatprep.mubr.bf16.mxu0 %v627_v46 }
 0x1de   :  { %v538_v0 = vadd.f32 %v1091_v51, %v1459_v28  ;;  %v529_v52 = vpop.f32.mrb[35].mxu1  ;;  %1133 = vmatmul.mubr.bf16.gmra.mrb[28].mxu0 %v628_v45  ;;  %v607_v53 = vmax.f32 %v535_v48, 0.0  ;;  %p1184_p3 = por %p1183_p2, %p1182_p1 }
 0x1df   :  { %v530_v31 = vadd.f32 %v1459_v28, %v529_v52  ;;  %v605_v55 = vmax.f32 %v527_v50, 0.0 }
 0x1e0   :  { %v608_v54 = vmax.f32 %v538_v0, 0.0  ;;  %p1185_p4 = pnand %p1184_p3, %p1178_p0 }
 0x1e1   :  { %v606_v56 = vmax.f32 %v530_v31, 0.0 }
 0x1e2   :  { %v630_v57 = vpack.c.bf16 %v608_v54, %v607_v53 }
 0x1e3   :  { %v629_v58 = vpack.c.bf16 %v606_v56, %v605_v55  ;;  %v1094_v59 = vpop.f32.mrb[36].mxu1 }
 0x1e4   :  { %v551_v60 = vadd.f32 %v1094_v59, %v1459_v28  ;;  %v542_v61 = vpop.f32.mrb[37].mxu1 }
 0x1e5   :  { %v543_v62 = vadd.f32 %v1459_v28, %v542_v61  ;;  %v1095_v63 = vpop.f32.mrb[38].mxu1  ;;  %1136 = vmatprep.mubr.bf16.mxu0 %v629_v58 }
 0x1e6   :  { %v554_v1 = vadd.f32 %v1095_v63, %v1459_v28  ;;  %v545_v2 = vpop.f32.mrb[39].mxu1  ;;  %1137 = vmatmul.mubr.bf16.gmra.mrb[32].mxu0 %v630_v57  ;;  %v611_v4 = vmax.f32 %v551_v60, 0.0 }
 0x1e7   :  { %v546_v3 = vadd.f32 %v1459_v28, %v545_v2  ;;  %v609_v6 = vmax.f32 %v543_v62, 0.0 }
 0x1e8   :  { %v612_v5 = vmax.f32 %v554_v1, 0.0 }
 0x1e9   :  { %v610_v7 = vmax.f32 %v546_v3, 0.0 }
 0x1ea   :  { %v632_v8 = vpack.c.bf16 %v612_v5, %v611_v4 }
 0x1eb   :  { %v631_v9 = vpack.c.bf16 %v610_v7, %v609_v6  ;;  %v1098_v10 = vpop.f32.mrb[40].mxu1 }
 0x1ec   :  { %v567_v11 = vadd.f32 %v1098_v10, %v1459_v28  ;;  %v558_v12 = vpop.f32.mrb[41].mxu1 }
 0x1ed   :  { %v559_v13 = vadd.f32 %v1459_v28, %v558_v12  ;;  %v1099_v14 = vpop.f32.mrb[42].mxu1  ;;  %1140 = vmatprep.mubr.bf16.mxu0 %v631_v9 }
 0x1ee   :  { %v570_v15 = vadd.f32 %v1099_v14, %v1459_v28  ;;  %v561_v16 = vpop.f32.mrb[43].mxu1  ;;  %1141 = vmatmul.mubr.bf16.gmra.mrb[36].mxu0 %v632_v8  ;;  %v615_v18 = vmax.f32 %v567_v11, 0.0 }
 0x1ef   :  { %v562_v17 = vadd.f32 %v1459_v28, %v561_v16  ;;  %v613_v20 = vmax.f32 %v559_v13, 0.0 }
 0x1f0   :  { %v616_v19 = vmax.f32 %v570_v15, 0.0 }
 0x1f1   :  { %v614_v21 = vmax.f32 %v562_v17, 0.0 }
 0x1f2   :  { %v634_v22 = vpack.c.bf16 %v616_v19, %v615_v18 }
 0x1f3   :  { %v633_v23 = vpack.c.bf16 %v614_v21, %v613_v20  ;;  %v1102_v24 = vpop.f32.mrb[44].mxu1 }
 0x1f4   :  { %v583_v25 = vadd.f32 %v1102_v24, %v1459_v28  ;;  %v574_v26 = vpop.f32.mrb[45].mxu1 }
 0x1f5   :  { %v575_v27 = vadd.f32 %v1459_v28, %v574_v26  ;;  %v1103_v29 = vpop.f32.mrb[46].mxu1  ;;  %1144 = vmatprep.mubr.bf16.mxu0 %v633_v23 }
 0x1f6   :  { %v586_v30 = vadd.f32 %v1103_v29, %v1459_v28  ;;  %v577_v32 = vpop.f32.mrb[47].mxu1  ;;  %1145 = vmatmul.mubr.bf16.gmra.mrb[40].mxu0 %v634_v22  ;;  %v619_v34 = vmax.f32 %v583_v25, 0.0 }
 0x1f7   :  { %v578_v33 = vadd.f32 %v1459_v28, %v577_v32  ;;  %v617_v36 = vmax.f32 %v575_v27, 0.0 }
 0x1f8   :  { %v620_v35 = vmax.f32 %v586_v30, 0.0 }
 0x1f9   :  { %v618_v37 = vmax.f32 %v578_v33, 0.0 }
 0x1fa   :  { %v636_v38 = vpack.c.bf16 %v620_v35, %v619_v34 }
 0x1fb   :  { %v635_v39 = vpack.c.bf16 %v618_v37, %v617_v36 }
 0x1fd   :  { %1148 = vmatprep.mubr.bf16.mxu0 %v635_v39 }
 0x1fe   :  { %1149 = vmatmul.mubr.bf16.gmra.mrb[44].mxu0 %v636_v38 }
 0x299   :  { %v1122_v41 = vpop.f32.mrb[16].mxu0 }
 0x29a   :  { %v751_v42 = vadd.f32 %v1122_v41, %v1496_v40  ;;  %v742_v43 = vpop.f32.mrb[17].mxu0 }
 0x29b   :  { %v743_v44 = vadd.f32 %v1496_v40, %v742_v43  ;;  %v1123_v28 = vpop.f32.mrb[18].mxu0 }
 0x29c   :  { %871 = vst [vmem:[#allocation2 + $0x10] sm:$0xff] %v751_v42  ;;  %v754_v45 = vadd.f32 %v1123_v28, %v1496_v40  ;;  %v745_v46 = vpop.f32.mrb[19].mxu0 }
 0x29d   :  { %869 = vst [vmem:[#allocation2] sm:$0xff] %v743_v44  ;;  %v746_v47 = vadd.f32 %v1496_v40, %v745_v46 }
 0x29e   :  { %872 = vst [vmem:[#allocation2 + $0x18] sm:$0xff] %v754_v45 }
 0x29f   :  { %870 = vst [vmem:[#allocation2 + $0x8] sm:$0xff] %v746_v47 }
 0x2a1   :  { %v1126_v48 = vpop.f32.mrb[20].mxu0 }
 0x2a2   :  { %v767_v49 = vadd.f32 %v1126_v48, %v1496_v40  ;;  %v758_v50 = vpop.f32.mrb[21].mxu0 }
 0x2a3   :  { %v759_v51 = vadd.f32 %v1496_v40, %v758_v50  ;;  %v1127_v0 = vpop.f32.mrb[22].mxu0 }
 0x2a4   :  { %875 = vst [vmem:[#allocation2 + $0x30] sm:$0xff] %v767_v49  ;;  %v770_v52 = vadd.f32 %v1127_v0, %v1496_v40  ;;  %v761_v31 = vpop.f32.mrb[23].mxu0 }
 0x2a5   :  { %873 = vst [vmem:[#allocation2 + $0x20] sm:$0xff] %v759_v51  ;;  %v762_v53 = vadd.f32 %v1496_v40, %v761_v31 }
 0x2a6   :  { %876 = vst [vmem:[#allocation2 + $0x38] sm:$0xff] %v770_v52 }
 0x2a7   :  { %874 = vst [vmem:[#allocation2 + $0x28] sm:$0xff] %v762_v53 }
 0x2a9   :  { %v1130_v54 = vpop.f32.mrb[24].mxu0 }
 0x2aa   :  { %v783_v55 = vadd.f32 %v1130_v54, %v1496_v40  ;;  %v774_v56 = vpop.f32.mrb[25].mxu0 }
 0x2ab   :  { %v775_v57 = vadd.f32 %v1496_v40, %v774_v56  ;;  %v1131_v58 = vpop.f32.mrb[26].mxu0 }
 0x2ac   :  { %879 = vst [vmem:[#allocation2 + $0x50] sm:$0xff] %v783_v55  ;;  %v786_v59 = vadd.f32 %v1131_v58, %v1496_v40  ;;  %v777_v60 = vpop.f32.mrb[27].mxu0 }
 0x2ad   :  { %877 = vst [vmem:[#allocation2 + $0x40] sm:$0xff] %v775_v57  ;;  %v778_v61 = vadd.f32 %v1496_v40, %v777_v60 }
 0x2ae   :  { %880 = vst [vmem:[#allocation2 + $0x58] sm:$0xff] %v786_v59 }
 0x2af   :  { %878 = vst [vmem:[#allocation2 + $0x48] sm:$0xff] %v778_v61 }
 0x2b1   :  { %v1134_v62 = vpop.f32.mrb[28].mxu0 }
 0x2b2   :  { %v799_v63 = vadd.f32 %v1134_v62, %v1496_v40  ;;  %v790_v1 = vpop.f32.mrb[29].mxu0 }
 0x2b3   :  { %v791_v2 = vadd.f32 %v1496_v40, %v790_v1  ;;  %v1135_v3 = vpop.f32.mrb[30].mxu0 }
 0x2b4   :  { %883 = vst [vmem:[#allocation2 + $0x70] sm:$0xff] %v799_v63  ;;  %v802_v4 = vadd.f32 %v1135_v3, %v1496_v40  ;;  %v793_v5 = vpop.f32.mrb[31].mxu0 }
 0x2b5   :  { %881 = vst [vmem:[#allocation2 + $0x60] sm:$0xff] %v791_v2  ;;  %v794_v6 = vadd.f32 %v1496_v40, %v793_v5 }
 0x2b6   :  { %884 = vst [vmem:[#allocation2 + $0x78] sm:$0xff] %v802_v4 }
 0x2b7   :  { %882 = vst [vmem:[#allocation2 + $0x68] sm:$0xff] %v794_v6 }
 0x2b9   :  { %v1138_v7 = vpop.f32.mrb[32].mxu0 }
 0x2ba   :  { %v815_v8 = vadd.f32 %v1138_v7, %v1496_v40  ;;  %v806_v9 = vpop.f32.mrb[33].mxu0 }
 0x2bb   :  { %v807_v10 = vadd.f32 %v1496_v40, %v806_v9  ;;  %v1139_v11 = vpop.f32.mrb[34].mxu0 }
 0x2bc   :  { %887 = vst [vmem:[#allocation2 + $0x90] sm:$0xff] %v815_v8  ;;  %v818_v12 = vadd.f32 %v1139_v11, %v1496_v40  ;;  %v809_v13 = vpop.f32.mrb[35].mxu0 }
 0x2bd   :  { %885 = vst [vmem:[#allocation2 + $0x80] sm:$0xff] %v807_v10  ;;  %v810_v14 = vadd.f32 %v1496_v40, %v809_v13 }
 0x2be   :  { %888 = vst [vmem:[#allocation2 + $0x98] sm:$0xff] %v818_v12 }
 0x2bf   :  { %886 = vst [vmem:[#allocation2 + $0x88] sm:$0xff] %v810_v14 }
 0x2c1   :  { %v1142_v15 = vpop.f32.mrb[36].mxu0 }
 0x2c2   :  { %v831_v16 = vadd.f32 %v1142_v15, %v1496_v40  ;;  %v822_v17 = vpop.f32.mrb[37].mxu0 }
 0x2c3   :  { %v823_v18 = vadd.f32 %v1496_v40, %v822_v17  ;;  %v1143_v19 = vpop.f32.mrb[38].mxu0 }
 0x2c4   :  { %891 = vst [vmem:[#allocation2 + $0xb0] sm:$0xff] %v831_v16  ;;  %v834_v20 = vadd.f32 %v1143_v19, %v1496_v40  ;;  %v825_v21 = vpop.f32.mrb[39].mxu0 }
 0x2c5   :  { %889 = vst [vmem:[#allocation2 + $0xa0] sm:$0xff] %v823_v18  ;;  %v826_v22 = vadd.f32 %v1496_v40, %v825_v21 }
 0x2c6   :  { %892 = vst [vmem:[#allocation2 + $0xb8] sm:$0xff] %v834_v20 }
 0x2c7   :  { %890 = vst [vmem:[#allocation2 + $0xa8] sm:$0xff] %v826_v22 }
 0x2c9   :  { %v1146_v23 = vpop.f32.mrb[40].mxu0 }
 0x2ca   :  { %v847_v24 = vadd.f32 %v1146_v23, %v1496_v40  ;;  %v838_v25 = vpop.f32.mrb[41].mxu0 }
 0x2cb   :  { %v839_v26 = vadd.f32 %v1496_v40, %v838_v25  ;;  %v1147_v27 = vpop.f32.mrb[42].mxu0 }
 0x2cc   :  { %895 = vst [vmem:[#allocation2 + $0xd0] sm:$0xff] %v847_v24  ;;  %v850_v29 = vadd.f32 %v1147_v27, %v1496_v40  ;;  %v841_v30 = vpop.f32.mrb[43].mxu0 }
 0x2cd   :  { %893 = vst [vmem:[#allocation2 + $0xc0] sm:$0xff] %v839_v26  ;;  %v842_v32 = vadd.f32 %v1496_v40, %v841_v30 }
 0x2ce   :  { %896 = vst [vmem:[#allocation2 + $0xd8] sm:$0xff] %v850_v29 }
 0x2cf   :  { %894 = vst [vmem:[#allocation2 + $0xc8] sm:$0xff] %v842_v32 }
 0x2d1   :  { %v1150_v33 = vpop.f32.mrb[44].mxu0 }
 0x2d2   :  { %v863_v34 = vadd.f32 %v1150_v33, %v1496_v40  ;;  %v854_v35 = vpop.f32.mrb[45].mxu0 }
 0x2d3   :  { %v855_v36 = vadd.f32 %v1496_v40, %v854_v35  ;;  %v1151_v37 = vpop.f32.mrb[46].mxu0 }
 0x2d4   :  { %899 = vst [vmem:[#allocation2 + $0xf0] sm:$0xff] %v863_v34  ;;  %v866_v38 = vadd.f32 %v1151_v37, %v1496_v40  ;;  %v857_v39 = vpop.f32.mrb[47].mxu0 }
 0x2d5   :  { %897 = vst [vmem:[#allocation2 + $0xe0] sm:$0xff] %v855_v36  ;;  %v858_v41 = vadd.f32 %v1496_v40, %v857_v39 }
 0x2d6   :  { %900 = vst [vmem:[#allocation2 + $0xf8] sm:$0xff] %v866_v38 }
 0x2d7   :  { %898 = vst [vmem:[#allocation2 + $0xe8] sm:$0xff] %v858_v41 }
 0x2d8   :  { %1188 = shalt.err (!%p1185_p4)
}
 0x2d9   :  { %s1189_s10 = scalar_lea.hbm %s1549_s7, 4096 }
 0x2da   :  { %p1190_p5 = scmp.ne.s32.totalorder %s1549_s7, %s1189_s10  ;;  %p1193_p6 = scmp.lt.u32.totalorder %s1189_s10, %s1549_s7 }
 0x2dc   :  { %p1195_p7 = pnand %p1193_p6, %p1190_p5 }
 0x2de   :  { %1198 = shalt.err (!%p1195_p7)
}
 0x2df   :  { %s1202_s13 = smov 128   ;;  %s1203_s14 = smov 8  }
 0x2e0   :  { %912 = dma.vmem_to_hbm [thread:$0]  %s907_s29, 4096, %s1549_s7, [#allocation3], %s1202_s13, %s1202_s13, %s1203_s14  }
 0x2e1   :  { %1199 = dma.done.wait [#allocation3], 4096  }
 0x2e2   :  { %1200 = vsyncadd [#allocation3], 4294963200 }
 0x2e3   :  { %916 = vsyncpa [#allocation3], 1 }

</bundles_post_ra>
